<compile_context>
chip_gen: v6e
topology: v6e:2x2x1
jax: 0.10.0
libtpu: 0.0.40
codegen_flags: <defaults>
</compile_context>

<pallas_src>
import functools

import jax
import jax.numpy as jnp
import numpy as np
from jax.experimental import pallas as pl
from jax.experimental.pallas import tpu as pltpu


_OUT_PAD = 128            # packed output lane width inside the kernel
_ROW_ALIGN = 16           # bf16 sublane tile -> keep weight sub-blocks aligned
_MAX_TILE = 1024          # cap on batch tile rows (fits 32 MiB scoped VMEM)
_VMEM_LIMIT = 32 * 1024 * 1024


def _round_up(x, m):
    return ((x + m - 1) // m) * m


def _layernorm(h, gamma, beta, eps=1e-5):
    mu = jnp.mean(h, axis=-1, keepdims=True)
    var = jnp.mean((h - mu) ** 2, axis=-1, keepdims=True)
    return (h - mu) * jax.lax.rsqrt(var + eps) * gamma + beta


# ----------------------------- kernel ---------------------------------------


def _fused_kernel(x_ref, w_ref, vec_ref, logits_ref, value_ref, *,
                  f, fp, hc1, ha1, hc2, ha2, num_outputs):
    """Both branches fused.  Lane layout: critic lanes first, actor lanes last.

    w_ref rows (bf16): [0,fp)=W1(F,d1) | [fp,fp+hc1)=W2_critic(hc1,hc2)
                       | [..+ha1)=W2_actor(ha1,ha2) | [..+d2)=W_out(d2,128)
    vec_ref rows (f32): 0=b1 1=g1 2=be1 3=b2 4=g2 5=be2 6=packed output bias.
    """
    f32, bf16 = jnp.float32, jnp.bfloat16
    d1, d2 = hc1 + ha1, hc2 + ha2
    r1, r2, r3 = fp, fp + hc1, fp + hc1 + ha1

    x = x_ref[...].astype(bf16)        # MXU operands in bf16, f32 accumulate
    vec = vec_ref[...]                 # biases / LN params stay f32

    # ---- layer 1: single fused matmul for both branches ---------------------
    h1 = jnp.tanh(jnp.dot(x, w_ref[0:f, :d1], preferred_element_type=f32)
                  + vec[0:1, :d1])
    # per-branch LayerNorm over the TRUE branch widths (128 critic / 64 actor)
    h1c = _layernorm(h1[:, :hc1], vec[1:2, :hc1], vec[2:3, :hc1])
    h1a = _layernorm(h1[:, hc1:d1], vec[1:2, hc1:d1], vec[2:3, hc1:d1])

    # ---- layer 2: only the true diagonal blocks (no zero-block FLOPs) -------
    pre2c = (jnp.dot(h1c.astype(bf16), w_ref[r1:r1 + hc1, :hc2],
                     preferred_element_type=f32) + vec[3:4, :hc2])
    pre2a = (jnp.dot(h1a.astype(bf16), w_ref[r2:r2 + ha1, :ha2],
                     preferred_element_type=f32) + vec[3:4, hc2:d2])
    h2c = _layernorm(jnp.tanh(pre2c), vec[4:5, :hc2], vec[5:6, :hc2])
    h2a = _layernorm(jnp.tanh(pre2a), vec[4:5, hc2:d2], vec[5:6, hc2:d2])

    # ---- output layer: concat splits exactly at lane 128 (vreg boundary,
    #      effectively free) so a single fused dot covers both branches -------
    h2 = jnp.concatenate([h2c.astype(bf16), h2a.astype(bf16)], axis=-1)
    o = (jnp.dot(h2, w_ref[r3:r3 + d2, :_OUT_PAD], preferred_element_type=f32)
         + vec[6:7, :_OUT_PAD])

    # ---- narrow stores: only the useful lanes leave VMEM --------------------
    logits_ref[...] = o[:, :num_outputs]
    value_ref[...] = o[:, num_outputs:num_outputs + 1]


# --------------------------- param packing ----------------------------------


def pack_params(actor_params, critic_params, actor_sizes, critic_sizes,
                num_outputs, obs_dim):
    """Pack both branches into one bf16 matrix slab + one f32 bias/LN slab."""
    ha1, ha2 = actor_sizes
    hc1, hc2 = critic_sizes
    d1, d2 = hc1 + ha1, hc2 + ha2
    assert num_outputs + 1 <= _OUT_PAD
    # keep every weight sub-block 16-row aligned (bf16 sublane tile)
    assert hc1 % _ROW_ALIGN == 0 and ha1 % _ROW_ALIGN == 0

    fp = _round_up(obs_dim, _ROW_ALIGN)
    lanes = max(d1, d2, _OUT_PAD)
    r1, r2, r3 = fp, fp + hc1, fp + hc1 + ha1
    rows = r3 + d2

    # ---- bf16 matrix slab: [W1 ; W2_critic ; W2_actor ; W_out] --------------
    mat = jnp.zeros((rows, lanes), jnp.float32)
    mat = mat.at[:obs_dim, :d1].set(
        jnp.concatenate([critic_params["w1"], actor_params["w1"]], axis=1))
    mat = mat.at[r1:r1 + hc1, :hc2].set(critic_params["w2"])
    mat = mat.at[r2:r2 + ha1, :ha2].set(actor_params["w2"])
    # output rows: critic features first (value lane), then actor (logit lanes)
    mat = mat.at[r3:r3 + hc2, num_outputs:num_outputs + 1].set(
        critic_params["wo"])
    mat = mat.at[r3 + hc2:r3 + d2, :num_outputs].set(actor_params["wo"])
    mat = mat.astype(jnp.bfloat16)

    # ---- f32 vector slab: biases / LN gamma / LN beta / output bias ---------
    vec = jnp.zeros((8, lanes), jnp.float32)

    def cat(c, a):
        return jnp.concatenate([c, a])

    vec = vec.at[0, :d1].set(cat(critic_params["b1"], actor_params["b1"]))
    vec = vec.at[1, :d1].set(cat(critic_params["g1"], actor_params["g1"]))
    vec = vec.at[2, :d1].set(cat(critic_params["be1"], actor_params["be1"]))
    vec = vec.at[3, :d2].set(cat(critic_params["b2"], actor_params["b2"]))
    vec = vec.at[4, :d2].set(cat(critic_params["g2"], actor_params["g2"]))
    vec = vec.at[5, :d2].set(cat(critic_params["be2"], actor_params["be2"]))
    bo = jnp.zeros((_OUT_PAD,), jnp.float32)
    bo = bo.at[:num_outputs].set(actor_params["bo"])
    bo = bo.at[num_outputs].set(critic_params["bo"][0])
    vec = vec.at[6, :_OUT_PAD].set(bo)
    return mat, vec


# ----------------------------- wrapper ---------------------------------------


def _pick_bm(batch):
    if batch <= 128:
        return batch                       # single block; no padding games
    # Give v7x's second TensorCore work (>=2 grid steps) while capping the
    # tile at 1024 rows so the f32 temporaries stay well inside 32 MiB VMEM.
    return min(_MAX_TILE, _round_up(pl.cdiv(batch, 2), 8))


def fused_forward(obs, packed, num_outputs, critic_sizes, actor_sizes):
    """Single pallas_call computing (logits, value) for both branches."""
    B, F = obs.shape
    mat, vec = packed
    hc1, hc2 = critic_sizes
    ha1, ha2 = actor_sizes

    bm = _pick_bm(B)
    grid = (pl.cdiv(B, bm),)

    kernel = functools.partial(
        _fused_kernel, f=F, fp=_round_up(F, _ROW_ALIGN),
        hc1=hc1, ha1=ha1, hc2=hc2, ha2=ha2, num_outputs=num_outputs)

    logits, value = pl.pallas_call(
        kernel,
        out_shape=(jax.ShapeDtypeStruct((B, num_outputs), jnp.float32),
                   jax.ShapeDtypeStruct((B, 1), jnp.float32)),
        grid=grid,
        in_specs=[
            pl.BlockSpec((bm, F), lambda i: (i, 0)),      # obs tile
            pl.BlockSpec(mat.shape, lambda i: (0, 0)),    # bf16 weight slab
            pl.BlockSpec(vec.shape, lambda i: (0, 0)),    # f32 bias/LN slab
        ],
        out_specs=(
            pl.BlockSpec((bm, num_outputs), lambda i: (i, 0)),   # logits
            pl.BlockSpec((bm, 1), lambda i: (i, 0)),             # value
        ),
        compiler_params=pltpu.CompilerParams(
            dimension_semantics=("parallel",),
            vmem_limit_bytes=_VMEM_LIMIT),
    )(obs, mat, vec)

    return logits, jnp.reshape(value, (-1,))


# --------------------------- param init -------------------------------------


def _normc_init(key, in_dim, out_dim, std=1.0):
    """Deterministic analogue of RLlib's torch_normc_initializer."""
    w = jax.random.normal(key, (in_dim, out_dim), dtype=jnp.float32)
    w = w / jnp.sqrt(jnp.sum(w * w, axis=0, keepdims=True))
    return w * std


def make_branch_params(key, in_dim, sizes, out_dim, out_std):
    assert len(sizes) == 2
    s1, s2 = sizes
    k1, k2, k3 = jax.random.split(key, 3)
    return {
        "w1": _normc_init(k1, in_dim, s1, 1.0),
        "b1": jnp.zeros((s1,), jnp.float32),
        "g1": jnp.ones((s1,), jnp.float32),
        "be1": jnp.zeros((s1,), jnp.float32),
        "w2": _normc_init(k2, s1, s2, 1.0),
        "b2": jnp.zeros((s2,), jnp.float32),
        "g2": jnp.ones((s2,), jnp.float32),
        "be2": jnp.zeros((s2,), jnp.float32),
        "wo": _normc_init(k3, s2, out_dim, out_std),
        "bo": jnp.zeros((out_dim,), jnp.float32),
    }


# --------------------------- pure-JAX reference ------------------------------


def _branch_ref(x, p):
    hp = jax.lax.Precision.HIGHEST
    h = jnp.tanh(jnp.dot(x, p["w1"], precision=hp) + p["b1"])
    h = _layernorm(h, p["g1"], p["be1"])
    h = jnp.tanh(jnp.dot(h, p["w2"], precision=hp) + p["b2"])
    h = _layernorm(h, p["g2"], p["be2"])
    return jnp.dot(h, p["wo"], precision=hp) + p["bo"]


# ----------------------------- main ------------------------------------------


if __name__ == "__main__":
    OBS_DIM = 8       # int(np.product(obs_space.shape))
    NUM_OUTPUTS = 4
    ACTOR_SIZES = [64, 64]      # default actor_sizes
    CRITIC_SIZES = [128, 128]   # default critic_sizes

    root = jax.random.PRNGKey(0)
    k_obs, k_actor, k_critic = jax.random.split(root, 3)

    actor_params = make_branch_params(
        k_actor, OBS_DIM, ACTOR_SIZES, NUM_OUTPUTS, out_std=1e-12)
    critic_params = make_branch_params(
        k_critic, OBS_DIM, CRITIC_SIZES, 1, out_std=0.01)

    packed = pack_params(actor_params, critic_params,
                         ACTOR_SIZES, CRITIC_SIZES, NUM_OUTPUTS, OBS_DIM)

    # B=2: latency-bound inference case.  B=260: exercises the multi-step
    # "parallel" batch grid with a partial last tile.
    for B in (2, 260):
        obs = jax.random.normal(jax.random.fold_in(k_obs, B),
                                (B, OBS_DIM), dtype=jnp.float32)
        logits, value = fused_forward(obs, packed, NUM_OUTPUTS,
                                      CRITIC_SIZES, ACTOR_SIZES)
        jax.block_until_ready((logits, value))

        # correctness check against an un-fused, f32-HIGHEST pure-JAX reference.
        # MXU operands are bf16 (same rounding as JAX's default TPU matmul
        # precision), so tolerances are sized for bf16 operand rounding.
        ref_logits = _branch_ref(obs, actor_params)
        ref_value = jnp.reshape(_branch_ref(obs, critic_params), (-1,))
        np.testing.assert_allclose(np.asarray(logits), np.asarray(ref_logits),
                                   rtol=2e-2, atol=1e-3)
        np.testing.assert_allclose(np.asarray(value), np.asarray(ref_value),
                                   rtol=2e-2, atol=1e-3)
        assert logits.shape == (B, NUM_OUTPUTS)
        assert value.shape == (B,)

    print("KERNEL_OK")
</pallas_src>

<mosaic_0001>
module attributes {stable_mosaic.version = 11 : i64} {
  func.func @_fused_kernel(%arg0: i32, %arg1: memref<2x8xf32, #tpu.memory_space<vmem>>, %arg2: memref<400x192xbf16, #tpu.memory_space<vmem>>, %arg3: memref<8x192xf32, #tpu.memory_space<vmem>>, %arg4: memref<2x4xf32, #tpu.memory_space<vmem>>, %arg5: memref<2x1xf32, #tpu.memory_space<vmem>>) attributes {dimension_semantics = [#tpu.dimension_semantics<parallel>], iteration_bounds = array<i64: 1>, scalar_prefetch = 0 : i64, scratch_operands = 0 : i64, tpu.core_type = #tpu.core_type<tc>, window_params = [{transform_indices = @transform_0, window_bounds = array<i64: 2, 8>}, {pipeline_mode = #tpu.pipeline_mode<synchronous>, transform_indices = @transform_1, window_bounds = array<i64: 400, 192>}, {pipeline_mode = #tpu.pipeline_mode<synchronous>, transform_indices = @transform_2, window_bounds = array<i64: 8, 192>}, {transform_indices = @transform_3, window_bounds = array<i64: 2, 4>}, {transform_indices = @transform_4, window_bounds = array<i64: 2, 1>}]} {
    %c0 = arith.constant 0 : index
    %c0_0 = arith.constant 0 : index
    %0 = vector.load %arg1[%c0, %c0_0] : memref<2x8xf32, #tpu.memory_space<vmem>>, vector<2x8xf32>
    %1 = arith.truncf %0 : vector<2x8xf32> to vector<2x8xbf16>
    %c0_1 = arith.constant 0 : index
    %c0_2 = arith.constant 0 : index
    %2 = vector.load %arg3[%c0_1, %c0_2] : memref<8x192xf32, #tpu.memory_space<vmem>>, vector<8x192xf32>
    %c0_3 = arith.constant 0 : index
    %c0_4 = arith.constant 0 : index
    %3 = vector.load %arg2[%c0_3, %c0_4] : memref<400x192xbf16, #tpu.memory_space<vmem>>, vector<8x192xbf16>
    %cst = arith.constant dense<0.000000e+00> : vector<2x192xf32>
    %4 = tpu.matmul %1, %3, %cst {dimension_numbers = #tpu.dot_dimension_numbers<[1], [0], [0], [1], [0, 0, 1, 1], [], []>} : vector<2x8xbf16>, vector<8x192xbf16>, vector<2x192xf32> -> vector<2x192xf32>
    %5 = vector.extract_strided_slice %2 {offsets = [0, 0], sizes = [1, 192], strides = [1, 1]} : vector<8x192xf32> to vector<1x192xf32>
    %6 = vector.broadcast %5 : vector<1x192xf32> to vector<2x192xf32>
    %7 = arith.addf %4, %6 : vector<2x192xf32>
    %8 = math.tanh %7 : vector<2x192xf32>
    %9 = vector.extract_strided_slice %8 {offsets = [0, 0], sizes = [2, 128], strides = [1, 1]} : vector<2x192xf32> to vector<2x128xf32>
    %10 = vector.extract_strided_slice %2 {offsets = [1, 0], sizes = [1, 128], strides = [1, 1]} : vector<8x192xf32> to vector<1x128xf32>
    %11 = vector.extract_strided_slice %2 {offsets = [2, 0], sizes = [1, 128], strides = [1, 1]} : vector<8x192xf32> to vector<1x128xf32>
    %cst_5 = arith.constant dense<0.000000e+00> : vector<2xf32>
    %12 = vector.multi_reduction <add>, %9, %cst_5 [1] : vector<2x128xf32> to vector<2xf32>
    %13 = vector.shape_cast %12 : vector<2xf32> to vector<2x1xf32>
    %cst_6 = arith.constant 1.280000e+02 : f32
    %14 = vector.broadcast %cst_6 : f32 to vector<2x1xf32>
    %15 = arith.divf %13, %14 : vector<2x1xf32>
    %16 = vector.broadcast %15 : vector<2x1xf32> to vector<2x128xf32>
    %17 = arith.subf %9, %16 : vector<2x128xf32>
    %18 = arith.mulf %17, %17 : vector<2x128xf32>
    %cst_7 = arith.constant dense<0.000000e+00> : vector<2xf32>
    %19 = vector.multi_reduction <add>, %18, %cst_7 [1] : vector<2x128xf32> to vector<2xf32>
    %20 = vector.shape_cast %19 : vector<2xf32> to vector<2x1xf32>
    %cst_8 = arith.constant 1.280000e+02 : f32
    %21 = vector.broadcast %cst_8 : f32 to vector<2x1xf32>
    %22 = arith.divf %20, %21 : vector<2x1xf32>
    %23 = vector.broadcast %15 : vector<2x1xf32> to vector<2x128xf32>
    %24 = arith.subf %9, %23 : vector<2x128xf32>
    %cst_9 = arith.constant 9.99999974E-6 : f32
    %25 = vector.broadcast %cst_9 : f32 to vector<2x1xf32>
    %26 = arith.addf %22, %25 : vector<2x1xf32>
    %27 = math.rsqrt %26 : vector<2x1xf32>
    %28 = vector.broadcast %27 : vector<2x1xf32> to vector<2x128xf32>
    %29 = arith.mulf %24, %28 : vector<2x128xf32>
    %30 = vector.broadcast %10 : vector<1x128xf32> to vector<2x128xf32>
    %31 = arith.mulf %29, %30 : vector<2x128xf32>
    %32 = vector.broadcast %11 : vector<1x128xf32> to vector<2x128xf32>
    %33 = arith.addf %31, %32 : vector<2x128xf32>
    %34 = vector.extract_strided_slice %8 {offsets = [0, 128], sizes = [2, 64], strides = [1, 1]} : vector<2x192xf32> to vector<2x64xf32>
    %35 = vector.extract_strided_slice %2 {offsets = [1, 128], sizes = [1, 64], strides = [1, 1]} : vector<8x192xf32> to vector<1x64xf32>
    %36 = vector.extract_strided_slice %2 {offsets = [2, 128], sizes = [1, 64], strides = [1, 1]} : vector<8x192xf32> to vector<1x64xf32>
    %cst_10 = arith.constant dense<0.000000e+00> : vector<2xf32>
    %37 = vector.multi_reduction <add>, %34, %cst_10 [1] : vector<2x64xf32> to vector<2xf32>
    %38 = vector.shape_cast %37 : vector<2xf32> to vector<2x1xf32>
    %cst_11 = arith.constant 6.400000e+01 : f32
    %39 = vector.broadcast %cst_11 : f32 to vector<2x1xf32>
    %40 = arith.divf %38, %39 : vector<2x1xf32>
    %41 = vector.broadcast %40 : vector<2x1xf32> to vector<2x64xf32>
    %42 = arith.subf %34, %41 : vector<2x64xf32>
    %43 = arith.mulf %42, %42 : vector<2x64xf32>
    %cst_12 = arith.constant dense<0.000000e+00> : vector<2xf32>
    %44 = vector.multi_reduction <add>, %43, %cst_12 [1] : vector<2x64xf32> to vector<2xf32>
    %45 = vector.shape_cast %44 : vector<2xf32> to vector<2x1xf32>
    %cst_13 = arith.constant 6.400000e+01 : f32
    %46 = vector.broadcast %cst_13 : f32 to vector<2x1xf32>
    %47 = arith.divf %45, %46 : vector<2x1xf32>
    %48 = vector.broadcast %40 : vector<2x1xf32> to vector<2x64xf32>
    %49 = arith.subf %34, %48 : vector<2x64xf32>
    %cst_14 = arith.constant 9.99999974E-6 : f32
    %50 = vector.broadcast %cst_14 : f32 to vector<2x1xf32>
    %51 = arith.addf %47, %50 : vector<2x1xf32>
    %52 = math.rsqrt %51 : vector<2x1xf32>
    %53 = vector.broadcast %52 : vector<2x1xf32> to vector<2x64xf32>
    %54 = arith.mulf %49, %53 : vector<2x64xf32>
    %55 = vector.broadcast %35 : vector<1x64xf32> to vector<2x64xf32>
    %56 = arith.mulf %54, %55 : vector<2x64xf32>
    %57 = vector.broadcast %36 : vector<1x64xf32> to vector<2x64xf32>
    %58 = arith.addf %56, %57 : vector<2x64xf32>
    %59 = arith.truncf %33 : vector<2x128xf32> to vector<2x128xbf16>
    %c16 = arith.constant 16 : index
    %c0_15 = arith.constant 0 : index
    %60 = vector.load %arg2[%c16, %c0_15] : memref<400x192xbf16, #tpu.memory_space<vmem>>, vector<128x128xbf16>
    %cst_16 = arith.constant dense<0.000000e+00> : vector<2x128xf32>
    %61 = tpu.matmul %59, %60, %cst_16 {dimension_numbers = #tpu.dot_dimension_numbers<[1], [0], [0], [1], [0, 0, 1, 1], [], []>} : vector<2x128xbf16>, vector<128x128xbf16>, vector<2x128xf32> -> vector<2x128xf32>
    %62 = vector.extract_strided_slice %2 {offsets = [3, 0], sizes = [1, 128], strides = [1, 1]} : vector<8x192xf32> to vector<1x128xf32>
    %63 = vector.broadcast %62 : vector<1x128xf32> to vector<2x128xf32>
    %64 = arith.addf %61, %63 : vector<2x128xf32>
    %65 = arith.truncf %58 : vector<2x64xf32> to vector<2x64xbf16>
    %c144 = arith.constant 144 : index
    %c0_17 = arith.constant 0 : index
    %66 = vector.load %arg2[%c144, %c0_17] : memref<400x192xbf16, #tpu.memory_space<vmem>>, vector<64x64xbf16>
    %cst_18 = arith.constant dense<0.000000e+00> : vector<2x64xf32>
    %67 = tpu.matmul %65, %66, %cst_18 {dimension_numbers = #tpu.dot_dimension_numbers<[1], [0], [0], [1], [0, 0, 1, 1], [], []>} : vector<2x64xbf16>, vector<64x64xbf16>, vector<2x64xf32> -> vector<2x64xf32>
    %68 = vector.extract_strided_slice %2 {offsets = [3, 128], sizes = [1, 64], strides = [1, 1]} : vector<8x192xf32> to vector<1x64xf32>
    %69 = vector.broadcast %68 : vector<1x64xf32> to vector<2x64xf32>
    %70 = arith.addf %67, %69 : vector<2x64xf32>
    %71 = math.tanh %64 : vector<2x128xf32>
    %72 = vector.extract_strided_slice %2 {offsets = [4, 0], sizes = [1, 128], strides = [1, 1]} : vector<8x192xf32> to vector<1x128xf32>
    %73 = vector.extract_strided_slice %2 {offsets = [5, 0], sizes = [1, 128], strides = [1, 1]} : vector<8x192xf32> to vector<1x128xf32>
    %cst_19 = arith.constant dense<0.000000e+00> : vector<2xf32>
    %74 = vector.multi_reduction <add>, %71, %cst_19 [1] : vector<2x128xf32> to vector<2xf32>
    %75 = vector.shape_cast %74 : vector<2xf32> to vector<2x1xf32>
    %cst_20 = arith.constant 1.280000e+02 : f32
    %76 = vector.broadcast %cst_20 : f32 to vector<2x1xf32>
    %77 = arith.divf %75, %76 : vector<2x1xf32>
    %78 = vector.broadcast %77 : vector<2x1xf32> to vector<2x128xf32>
    %79 = arith.subf %71, %78 : vector<2x128xf32>
    %80 = arith.mulf %79, %79 : vector<2x128xf32>
    %cst_21 = arith.constant dense<0.000000e+00> : vector<2xf32>
    %81 = vector.multi_reduction <add>, %80, %cst_21 [1] : vector<2x128xf32> to vector<2xf32>
    %82 = vector.shape_cast %81 : vector<2xf32> to vector<2x1xf32>
    %cst_22 = arith.constant 1.280000e+02 : f32
    %83 = vector.broadcast %cst_22 : f32 to vector<2x1xf32>
    %84 = arith.divf %82, %83 : vector<2x1xf32>
    %85 = vector.broadcast %77 : vector<2x1xf32> to vector<2x128xf32>
    %86 = arith.subf %71, %85 : vector<2x128xf32>
    %cst_23 = arith.constant 9.99999974E-6 : f32
    %87 = vector.broadcast %cst_23 : f32 to vector<2x1xf32>
    %88 = arith.addf %84, %87 : vector<2x1xf32>
    %89 = math.rsqrt %88 : vector<2x1xf32>
    %90 = vector.broadcast %89 : vector<2x1xf32> to vector<2x128xf32>
    %91 = arith.mulf %86, %90 : vector<2x128xf32>
    %92 = vector.broadcast %72 : vector<1x128xf32> to vector<2x128xf32>
    %93 = arith.mulf %91, %92 : vector<2x128xf32>
    %94 = vector.broadcast %73 : vector<1x128xf32> to vector<2x128xf32>
    %95 = arith.addf %93, %94 : vector<2x128xf32>
    %96 = math.tanh %70 : vector<2x64xf32>
    %97 = vector.extract_strided_slice %2 {offsets = [4, 128], sizes = [1, 64], strides = [1, 1]} : vector<8x192xf32> to vector<1x64xf32>
    %98 = vector.extract_strided_slice %2 {offsets = [5, 128], sizes = [1, 64], strides = [1, 1]} : vector<8x192xf32> to vector<1x64xf32>
    %cst_24 = arith.constant dense<0.000000e+00> : vector<2xf32>
    %99 = vector.multi_reduction <add>, %96, %cst_24 [1] : vector<2x64xf32> to vector<2xf32>
    %100 = vector.shape_cast %99 : vector<2xf32> to vector<2x1xf32>
    %cst_25 = arith.constant 6.400000e+01 : f32
    %101 = vector.broadcast %cst_25 : f32 to vector<2x1xf32>
    %102 = arith.divf %100, %101 : vector<2x1xf32>
    %103 = vector.broadcast %102 : vector<2x1xf32> to vector<2x64xf32>
    %104 = arith.subf %96, %103 : vector<2x64xf32>
    %105 = arith.mulf %104, %104 : vector<2x64xf32>
    %cst_26 = arith.constant dense<0.000000e+00> : vector<2xf32>
    %106 = vector.multi_reduction <add>, %105, %cst_26 [1] : vector<2x64xf32> to vector<2xf32>
    %107 = vector.shape_cast %106 : vector<2xf32> to vector<2x1xf32>
    %cst_27 = arith.constant 6.400000e+01 : f32
    %108 = vector.broadcast %cst_27 : f32 to vector<2x1xf32>
    %109 = arith.divf %107, %108 : vector<2x1xf32>
    %110 = vector.broadcast %102 : vector<2x1xf32> to vector<2x64xf32>
    %111 = arith.subf %96, %110 : vector<2x64xf32>
    %cst_28 = arith.constant 9.99999974E-6 : f32
    %112 = vector.broadcast %cst_28 : f32 to vector<2x1xf32>
    %113 = arith.addf %109, %112 : vector<2x1xf32>
    %114 = math.rsqrt %113 : vector<2x1xf32>
    %115 = vector.broadcast %114 : vector<2x1xf32> to vector<2x64xf32>
    %116 = arith.mulf %111, %115 : vector<2x64xf32>
    %117 = vector.broadcast %97 : vector<1x64xf32> to vector<2x64xf32>
    %118 = arith.mulf %116, %117 : vector<2x64xf32>
    %119 = vector.broadcast %98 : vector<1x64xf32> to vector<2x64xf32>
    %120 = arith.addf %118, %119 : vector<2x64xf32>
    %121 = arith.truncf %95 : vector<2x128xf32> to vector<2x128xbf16>
    %122 = arith.truncf %120 : vector<2x64xf32> to vector<2x64xbf16>
    %123 = tpu.concatenate %121, %122 in 1 : vector<2x128xbf16>, vector<2x64xbf16> -> vector<2x192xbf16>
    %c208 = arith.constant 208 : index
    %c0_29 = arith.constant 0 : index
    %124 = vector.load %arg2[%c208, %c0_29] : memref<400x192xbf16, #tpu.memory_space<vmem>>, vector<192x128xbf16>
    %cst_30 = arith.constant dense<0.000000e+00> : vector<2x128xf32>
    %125 = tpu.matmul %123, %124, %cst_30 {dimension_numbers = #tpu.dot_dimension_numbers<[1], [0], [0], [1], [0, 0, 1, 1], [], []>} : vector<2x192xbf16>, vector<192x128xbf16>, vector<2x128xf32> -> vector<2x128xf32>
    %126 = vector.extract_strided_slice %2 {offsets = [6, 0], sizes = [1, 128], strides = [1, 1]} : vector<8x192xf32> to vector<1x128xf32>
    %127 = vector.broadcast %126 : vector<1x128xf32> to vector<2x128xf32>
    %128 = arith.addf %125, %127 : vector<2x128xf32>
    %129 = vector.extract_strided_slice %128 {offsets = [0, 0], sizes = [2, 4], strides = [1, 1]} : vector<2x128xf32> to vector<2x4xf32>
    %c0_31 = arith.constant 0 : index
    %c0_32 = arith.constant 0 : index
    %130 = vector.load %arg4[%c0_31, %c0_32] : memref<2x4xf32, #tpu.memory_space<vmem>>, vector<2x4xf32>
    tpu.vector_store %arg4[%c0_31, %c0_32], %129 {strides = array<i32>} : memref<2x4xf32, #tpu.memory_space<vmem>>, vector<2x4xf32>,
    %131 = vector.extract_strided_slice %128 {offsets = [0, 4], sizes = [2, 1], strides = [1, 1]} : vector<2x128xf32> to vector<2x1xf32>
    %c0_33 = arith.constant 0 : index
    %c0_34 = arith.constant 0 : index
    %132 = vector.load %arg5[%c0_33, %c0_34] : memref<2x1xf32, #tpu.memory_space<vmem>>, vector<2x1xf32>
    tpu.vector_store %arg5[%c0_33, %c0_34], %131 {strides = array<i32>} : memref<2x1xf32, #tpu.memory_space<vmem>>, vector<2x1xf32>,
    return
  }
  func.func @transform_0(%arg0: i32) -> (i32, i32) {
    %c0_i32 = arith.constant 0 : i32
    %c0_i32_0 = arith.constant 0 : i32
    return %arg0, %c0_i32 : i32, i32
  }
  func.func @transform_1(%arg0: i32) -> (i32, i32) {
    %c0_i32 = arith.constant 0 : i32
    %c0_i32_0 = arith.constant 0 : i32
    %c0_i32_1 = arith.constant 0 : i32
    return %c0_i32, %c0_i32_0 : i32, i32
  }
  func.func @transform_2(%arg0: i32) -> (i32, i32) {
    %c0_i32 = arith.constant 0 : i32
    %c0_i32_0 = arith.constant 0 : i32
    %c0_i32_1 = arith.constant 0 : i32
    return %c0_i32, %c0_i32_0 : i32, i32
  }
  func.func @transform_3(%arg0: i32) -> (i32, i32) {
    %c0_i32 = arith.constant 0 : i32
    %c0_i32_0 = arith.constant 0 : i32
    return %arg0, %c0_i32 : i32, i32
  }
  func.func @transform_4(%arg0: i32) -> (i32, i32) {
    %c0_i32 = arith.constant 0 : i32
    %c0_i32_0 = arith.constant 0 : i32
    return %arg0, %c0_i32 : i32, i32
  }
}

</mosaic_0001>

<bundles_post_ra>
// kernel: tpu_custom_call.1
= control target key start
LH: loop header
LB: loop body
LE: loop exit
PB: predicated region body
PF: predicated region fallthrough
CT: control target
= control target key end

     0   :  { %vm40_vm0 = vcmask 1043456   ;;  %v694_v4 = vmov 0   ;;  %vm36_vm1 = vcmask 64512   ;;  %s879_s0 = inlined_call_operand.vmem [shape: f32[2,8], index: 0, kind: input, shape index: {}]   ;;  %s880_s1 = inlined_call_operand.vmem [shape: bf16[400,192], index: 1, kind: input, shape index: {}]   ;;  %s881_s2 = inlined_call_operand.vmem [shape: f32[8,192], index: 2, kind: input, shape index: {}]   ;;  %s882_s3 = inlined_call_operand.hbm [shape: f32[2,4], index: 3, kind: output, shape index: {0}]   ;;  %s883_s4 = inlined_call_operand.vmem [shape: f32[2,1], index: 4, kind: output, shape index: {1}]  }
   0x1   :  { %v22_v0 = vld [vmem:[%s880_s1] sm:$0xff]  ;;  %79 = vmatprep.mubr.bf16.mxu0 %v694_v4 }
   0x2   :  { %v18_v1 = vld [vmem:[%s879_s0] sm:$0x3]  ;;  %v550_v2 = vcombine.high %v22_v0, %v22_v0  ;;  %v549_v3 = vcombine.low %v22_v0, %v22_v0 }
   0x3   :  { %v19_v6 = vpack.c.bf16 %v18_v1, %v18_v1 }
   0x4   :  { %551 = vmatprep.subr.msk.bf16.mxu0 %vm40_vm0, %v550_v2  ;;  %v42_v5 = vsel %vm40_vm0, %v549_v3, 0 }
   0x5   :  { %62 = vmatpush1.bf16.msra.mxu0 %v42_v5 }
   0x6   :  { %483 = vmatprep.subr.bf16.mxu0 %v694_v4 }
   0x8   :  { %552 = vmatmul.mubr.msk.bf16.vlgmr.msra.gmra.mxu0 %vm36_vm1, %v19_v6 }
   0x9   :  { %10 = vsyncpa [#allocation3], 0  ;;  %v23_v7 = vlaneseq  ;;  %v738_v10 = vld [vmem:[%s881_s2] sm:$0xff]  ;;  %v743_v11 = vld [vmem:[%s881_s2 + $0x8] sm:$0xff]  ;;  %vm90_vm2 = vcmask 1041408   ;;  %vm115_vm3 = vcmask 517120  }
   0xa   :  { %v632_v24 = vld [vmem:[%s880_s1 + $0x80] ss:$8 sps:$4 sm:$0xff]   ;;  %v695_v25 = vmov 0.0   ;;  %v633_v26 = vld [vmem:[%s880_s1 + $0x70] ss:$8 sps:$4 sm:$0xff]   ;;  %vm696_vm4 = vmmov 0  }
   0xb   :  { %v732_v8 = vshrl.u32 %v23_v7, 7  ;;  %593 = vmatprep.subr.bf16.mxu1 %v695_v25  ;;  %v634_v37 = vld [vmem:[%s880_s1 + $0x60] ss:$8 sps:$4 sm:$0xff]   ;;  %v635_v38 = vld [vmem:[%s880_s1 + $0x50] ss:$8 sps:$4 sm:$0xff]   ;;  %609 = vmatprep.mubr.msk.bf16.mxu1 %vm696_vm4, %v695_v25  ;;  %vm286_vm5 = vcmask 523264  }
   0xc   :  { %594 = vmatpush3.bf16.msra.mxu1 %v632_v24  ;;  %v636_v39 = vld [vmem:[%s880_s1 + $0x40] ss:$8 sps:$4 sm:$0xff]   ;;  %v637_v40 = vld [vmem:[%s880_s1 + $0x30] ss:$8 sps:$4 sm:$0xff]   ;;  %vm523_vm6 = vcmask 25600   ;;  %s698_s16 = smov 124  }
   0xd   :  { %v25_v9 = vsub.s32 0, %v732_v8  ;;  %595 = vmatprep.subr.bf16.mxu1 %v695_v25  ;;  %v638_v41 = vld [vmem:[%s880_s1 + $0x20] ss:$8 sps:$4 sm:$0xff]   ;;  %v639_v42 = vld [vmem:[%s880_s1 + $0x10] ss:$8 sps:$4 sm:$0xff]   ;;  %v107_v49 = vsub.s32 1, %v732_v8 }
   0xe   :  { %v112_v50 = vsub.s32 2, %v732_v8  ;;  %v640_v57 = vld [vmem:[%s880_s1 + $0xc0] ss:$8 sps:$4 sm:$0xff]   ;;  %v641_v60 = vld [vmem:[%s880_s1 + $0xb0] ss:$8 sps:$4 sm:$0xff]   ;;  %v159_v6 = vsub.s32 3, %v732_v8 }
   0xf   :  { %v26_v12 = vrot.slane %v738_v10, %v25_v9  ;;  %v30_v13 = vrot.slane %v743_v11, %v25_v9  ;;  %v108_v51 = vrot.slane %v738_v10, %v107_v49  ;;  %v133_v62 = vrot.slane %v743_v11, %v107_v49  ;;  %v642_v63 = vld [vmem:[%s880_s1 + $0xa0] ss:$8 sps:$4 sm:$0xff]   ;;  %v643_v2 = vld [vmem:[%s880_s1 + $0x90] ss:$8 sps:$4 sm:$0xff]  }
  0x10   :  { %596 = vmatpush3.bf16.msra.mxu1 %v633_v26  ;;  %v113_v54 = vrot.slane %v738_v10, %v112_v50  ;;  %v138_v0 = vrot.slane %v743_v11, %v112_v50  ;;  %v160_v7 = vrot.slane %v738_v10, %v159_v6  ;;  %v644_v26 = vld [vmem:[%s880_s1 + $0x140] ss:$8 sps:$4 sm:$0xff]  }
  0x11   :  { %597 = vmatprep.subr.bf16.mxu1 %v695_v25  ;;  %484 = vmatpush1.bf16.msra.mxu0 %v644_v26 }
  0x12   :  { %485 = vmatprep.subr.bf16.mxu0 %v694_v4 }
  0x14   :  { %598 = vmatpush3.bf16.msra.mxu1 %v634_v37 }
  0x15   :  { %599 = vmatprep.subr.bf16.mxu1 %v695_v25 }
  0x18   :  { %600 = vmatpush3.bf16.msra.mxu1 %v635_v38  ;;  %v647_v38 = vld [vmem:[%s880_s1 + $0x110] ss:$8 sps:$4 sm:$0xff]  }
  0x19   :  { %601 = vmatprep.subr.bf16.mxu1 %v695_v25 }
  0x1c   :  { %602 = vmatpush3.bf16.msra.mxu1 %v636_v39 }
  0x1d   :  { %603 = vmatprep.subr.bf16.mxu1 %v695_v25 }
  0x20   :  { %604 = vmatpush3.bf16.msra.mxu1 %v637_v40  ;;  %v648_v40 = vld [vmem:[%s880_s1 + $0x100] ss:$8 sps:$4 sm:$0xff]  }
  0x21   :  { %605 = vmatprep.subr.bf16.mxu1 %v695_v25 }
  0x24   :  { %606 = vmatpush3.bf16.msra.mxu1 %v638_v41  ;;  %v649_v41 = vld [vmem:[%s880_s1 + $0xf0] ss:$8 sps:$4 sm:$0xff]  }
  0x25   :  { %607 = vmatprep.subr.bf16.mxu1 %v695_v25 }
  0x28   :  { %608 = vmatpush3.bf16.msra.mxu1 %v639_v42  ;;  %v650_v42 = vld [vmem:[%s880_s1 + $0xe0] ss:$8 sps:$4 sm:$0xff]  }
  0x29   :  { %613 = vmatprep.subr.bf16.mxu1 %v695_v25 }
  0xc8   :  { %v81_v14 = vpop.f32.mrf.mxu0 }
  0xc9   :  { %v82_v15 = vadd.f32 %v81_v14, %v26_v12 }
  0xca   :  { %v83_v16 = vpop.f32.mrf.mxu0 }
  0xcb   :  { %656 = vtanh.f32 %v82_v15  ;;  %v84_v17 = vadd.f32 %v83_v16, %v30_v13  ;;  %v261_v16 = vrot.slane %v743_v11, %v159_v6  ;;  %v406_v6 = vsub.s32 6, %v732_v8 }
  0xcc   :  { %v85_v18 = vpop.f32.mrf.mxu0 }
  0xcd   :  { %658 = vtanh.f32 %v84_v17 }
  0xce   :  { %v86_v19 = vpop.f32.mrf.mxu0 }
  0xd8   :  { %v657_v20 = vpop.eup %656 }
  0xd9   :  { %v91_v21 = vsel %vm90_vm2, %v657_v20, 0.0 }
  0xda   :  { %v659_v22 = vpop.eup %658  ;;  %92 = vadd.xlane.f32.xlu0 %v91_v21 }
  0xdb   :  { %v116_v23 = vsel %vm115_vm3, %v659_v22, 0.0 }
  0xde   :  { %117 = vadd.xlane.f32.xlu0 %v116_v23 }
 0x163   :  { %v93_v27 = vpop.xlane.xlu0 %92 }
 0x164   :  { %v95_v28 = vmul.f32 0.0078125, %v93_v27  ;;  %v645_v27 = vld [vmem:[%s880_s1 + $0x130] ss:$8 sps:$4 sm:$0xff]  }
 0x165   :  { %486 = vmatpush1.bf16.msra.mxu0 %v645_v27 }
 0x166   :  { %v96_v29 = vsub.f32 %v657_v20, %v95_v28  ;;  %487 = vmatprep.subr.bf16.mxu0 %v694_v4 }
 0x167   :  { %v118_v30 = vpop.xlane.xlu0 %117 }
 0x168   :  { %v120_v31 = vmul.f32 0.015625, %v118_v30  ;;  %v97_v32 = vmul.f32 %v96_v29, %v96_v29 }
 0x16a   :  { %v121_v33 = vsub.f32 %v659_v22, %v120_v31  ;;  %v98_v34 = vsel %vm90_vm2, %v97_v32, 0.0 }
 0x16b   :  { %99 = vadd.xlane.f32.xlu1 %v98_v34 }
 0x16c   :  { %v122_v35 = vmul.f32 %v121_v33, %v121_v33 }
 0x16e   :  { %v123_v36 = vsel %vm115_vm3, %v122_v35, 0.0 }
 0x16f   :  { %124 = vadd.xlane.f32.xlu1 %v123_v36  ;;  %v646_v36 = vld [vmem:[%s880_s1 + $0x120] ss:$8 sps:$4 sm:$0xff]  }
 0x170   :  { %488 = vmatpush1.bf16.msra.mxu0 %v646_v36 }
 0x171   :  { %489 = vmatprep.subr.bf16.mxu0 %v694_v4 }
 0x174   :  { %490 = vmatpush1.bf16.msra.mxu0 %v647_v38 }
 0x175   :  { %491 = vmatprep.subr.bf16.mxu0 %v694_v4 }
 0x178   :  { %492 = vmatpush1.bf16.msra.mxu0 %v648_v40 }
 0x179   :  { %493 = vmatprep.subr.bf16.mxu0 %v694_v4 }
 0x17c   :  { %494 = vmatpush1.bf16.msra.mxu0 %v649_v41 }
 0x17d   :  { %495 = vmatprep.subr.bf16.mxu0 %v694_v4 }
 0x180   :  { %496 = vmatpush1.bf16.msra.mxu0 %v650_v42 }
 0x181   :  { %497 = vmatprep.subr.bf16.mxu0 %v694_v4 }
 0x1f4   :  { %v100_v43 = vpop.xlane.xlu1 %99 }
 0x1f5   :  { %v101_v44 = vmul.f32 0.0078125, %v100_v43  ;;  %v651_v43 = vld [vmem:[%s880_s1 + $0xd0] ss:$8 sps:$4 sm:$0xff]  }
 0x1f6   :  { %498 = vmatpush1.bf16.msra.mxu0 %v651_v43 }
 0x1f7   :  { %v102_v45 = vadd.f32 1e-05, %v101_v44  ;;  %v652_v44 = vld [vmem:[%s880_s1 + $0x180] ss:$8 sps:$4 sm:$0xff]   ;;  %507 = vmatprep.subr.bf16.mxu0 %v694_v4 }
 0x1f8   :  { %v125_v46 = vpop.xlane.xlu1 %124 }
 0x1f9   :  { %660 = vrsqrt.f32 %v102_v45  ;;  %v126_v47 = vmul.f32 0.015625, %v125_v46  ;;  %v653_v45 = vld [vmem:[%s880_s1 + $0x170] ss:$8 sps:$4 sm:$0xff]   ;;  %v654_v46 = vld [vmem:[%s880_s1 + $0x160] ss:$8 sps:$4 sm:$0xff]  }
 0x1fa   :  { %508 = vmatpush2.bf16.msra.mxu0 %v652_v44 }
 0x1fb   :  { %v127_v48 = vadd.f32 1e-05, %v126_v47  ;;  %509 = vmatprep.subr.bf16.mxu0 %v694_v4  ;;  %v655_v47 = vld [vmem:[%s880_s1 + $0x150] ss:$8 sps:$4 sm:$0xff]   ;;  %s697_s1 = smov [#allocation2]  }
 0x1fc   :  { %s537_s15 = sshll.u32 %s697_s1, 4  ;;  %s538_s15 = int_to_ptr.vmem [resolvable:$true] %s537_s15 }
 0x1fd   :  { %662 = vrsqrt.f32 %v127_v48  ;;  %s672_s17 = scalar_lea.vmem %s538_s15, 32  ;;  %p677_p1 = scmp.lt.s32.totalorder %s538_s15, %s538_s15 }
 0x1fe   :  { %510 = vmatpush2.bf16.msra.mxu0 %v653_v45  ;;  %p673_p0 = scmp.ne.s32.totalorder %s538_s15, %s672_s17  ;;  %p678_p2 = scmp.lt.s32.totalorder %s672_s17, %s672_s17 }
 0x1ff   :  { %511 = vmatprep.subr.bf16.mxu0 %v694_v4 }
 0x200   :  { %p679_p3 = por %p678_p2, %p677_p1 }
 0x202   :  { %512 = vmatpush2.bf16.msra.mxu0 %v654_v46  ;;  %p680_p4 = pnand %p679_p3, %p673_p0 }
 0x203   :  { %513 = vmatprep.subr.bf16.mxu0 %v694_v4 }
 0x206   :  { %v661_v52 = vpop.eup %660  ;;  %514 = vmatpush2.bf16.msra.mxu0 %v655_v47 }
 0x207   :  { %v104_v53 = vmul.f32 %v661_v52, %v96_v29 }
 0x209   :  { %v109_v55 = vmul.f32 %v108_v51, %v104_v53 }
 0x20a   :  { %v663_v59 = vpop.eup %662 }
 0x20b   :  { %v114_v56 = vadd.f32 %v113_v54, %v109_v55  ;;  %v129_v61 = vmul.f32 %v663_v59, %v121_v33  ;;  %v346_v54 = vsub.s32 4, %v732_v8 }
 0x20d   :  { %v140_v58 = vpack.c.bf16 %v114_v56, %v114_v56  ;;  %v134_v1 = vmul.f32 %v133_v62, %v129_v61  ;;  %v351_v56 = vsub.s32 5, %v732_v8  ;;  %v371_v59 = vrot.slane %v743_v11, %v346_v54 }
 0x20f   :  { %610 = vmatmul.mubr.bf16.vlgmr.msra.gmra.mxu1 %v140_v58  ;;  %v139_v3 = vadd.f32 %v138_v0, %v134_v1  ;;  %v347_v58 = vrot.slane %v738_v10, %v346_v54  ;;  %v352_v61 = vrot.slane %v738_v10, %v351_v56 }
 0x210   :  { %614 = vmatpush3.bf16.msra.mxu1 %v640_v57  ;;  %621 = vmatprep.mubr.msk.bf16.mxu1 %vm696_vm4, %v695_v25 }
 0x211   :  { %615 = vmatprep.subr.bf16.mxu1 %v695_v25  ;;  %v249_v5 = vpack.c.bf16 %v139_v3, %v139_v3 }
 0x214   :  { %616 = vmatpush3.bf16.msra.mxu1 %v641_v60 }
 0x215   :  { %617 = vmatprep.subr.bf16.mxu1 %v695_v25 }
 0x218   :  { %618 = vmatpush3.bf16.msra.mxu1 %v642_v63  ;;  %v376_v63 = vrot.slane %v743_v11, %v351_v56 }
 0x219   :  { %619 = vmatprep.subr.bf16.mxu1 %v695_v25 }
 0x21c   :  { %620 = vmatpush3.bf16.msra.mxu1 %v643_v2 }
 0x21f   :  { %622 = vmatmul.mubr.msk.bf16.vlgmr.msra.gmra.mxu1 %vm286_vm5, %v249_v5 }
 0x2cf   :  { %v243_v9 = vpop.f32.mrf.mxu1 }
 0x2d0   :  { %v244_v12 = vadd.f32 %v243_v9, %v160_v7  ;;  %v407_v7 = vrot.slane %v738_v10, %v406_v6 }
 0x2d1   :  { %v611_v13 = vpop.f32.mrf.mxu1 }
 0x2d2   :  { %664 = vtanh.f32 %v244_v12 }
 0x2d3   :  { %v246_v14 = vpop.f32.mrf.mxu1 }
 0x2d5   :  { %v612_v15 = vpop.f32.mrf.mxu1 }
 0x2df   :  { %v665_v17 = vpop.eup %664  ;;  %v324_v18 = vpop.f32.mrf.mxu1 }
 0x2e0   :  { %v325_v19 = vadd.f32 %v324_v18, %v261_v16  ;;  %v331_v20 = vsel %vm90_vm2, %v665_v17, 0.0 }
 0x2e1   :  { %v623_v21 = vpop.f32.mrf.mxu1  ;;  %332 = vadd.xlane.f32.xlu1 %v331_v20 }
 0x2e2   :  { %666 = vtanh.f32 %v325_v19 }
 0x2e3   :  { %v327_v22 = vpop.f32.mrf.mxu1 }
 0x2e5   :  { %v624_v23 = vpop.f32.mrf.mxu1 }
 0x2ef   :  { %v667_v24 = vpop.eup %666 }
 0x2f0   :  { %v355_v25 = vsel %vm115_vm3, %v667_v24, 0.0 }
 0x2f1   :  { %356 = vadd.xlane.f32.xlu0 %v355_v25 }
 0x36a   :  { %v333_v28 = vpop.xlane.xlu1 %332 }
 0x36b   :  { %v334_v29 = vmul.f32 0.0078125, %v333_v28 }
 0x36d   :  { %v335_v30 = vsub.f32 %v665_v17, %v334_v29 }
 0x36f   :  { %v336_v31 = vmul.f32 %v335_v30, %v335_v30 }
 0x371   :  { %v337_v32 = vsel %vm90_vm2, %v336_v31, 0.0 }
 0x372   :  { %338 = vadd.xlane.f32.xlu1 %v337_v32 }
 0x37a   :  { %v357_v33 = vpop.xlane.xlu0 %356 }
 0x37b   :  { %v358_v34 = vmul.f32 0.015625, %v357_v33 }
 0x37d   :  { %v359_v35 = vsub.f32 %v667_v24, %v358_v34 }
 0x37f   :  { %v360_v37 = vmul.f32 %v359_v35, %v359_v35 }
 0x381   :  { %v361_v39 = vsel %vm115_vm3, %v360_v37, 0.0 }
 0x382   :  { %362 = vadd.xlane.f32.xlu0 %v361_v39 }
 0x3fb   :  { %v339_v48 = vpop.xlane.xlu1 %338 }
 0x3fc   :  { %v340_v49 = vmul.f32 0.0078125, %v339_v48 }
 0x3fe   :  { %v341_v50 = vadd.f32 1e-05, %v340_v49 }
 0x400   :  { %668 = vrsqrt.f32 %v341_v50 }
 0x40b   :  { %v363_v51 = vpop.xlane.xlu0 %362 }
 0x40c   :  { %v364_v52 = vmul.f32 0.015625, %v363_v51 }
 0x40d   :  { %v669_v55 = vpop.eup %668 }
 0x40e   :  { %v365_v53 = vadd.f32 1e-05, %v364_v52  ;;  %v343_v57 = vmul.f32 %v669_v55, %v335_v30 }
 0x410   :  { %670 = vrsqrt.f32 %v365_v53  ;;  %v348_v60 = vmul.f32 %v347_v58, %v343_v57 }
 0x412   :  { %v353_v1 = vadd.f32 %v352_v61, %v348_v60 }
 0x414   :  { %v378_v5 = vpack.c.bf16 %v353_v1, %v353_v1 }
 0x41d   :  { %v671_v4 = vpop.eup %670 }
 0x41e   :  { %v367_v62 = vmul.f32 %v671_v4, %v359_v35 }
 0x420   :  { %v372_v0 = vmul.f32 %v371_v59, %v367_v62 }
 0x422   :  { %v377_v2 = vadd.f32 %v376_v63, %v372_v0 }
 0x424   :  { %v379_v3 = vpack.c.bf16 %v377_v2, %v377_v2 }
 0x426   :  { %578 = vmatprep.mubr.msk.bf16.mxu0 %vm286_vm5, %v379_v3 }
 0x427   :  { %516 = vmatmul.mubr.bf16.vlgmr.msra.gmra.mxu0 %v378_v5 }
 0x4e7   :  { %v517_v9 = vpop.f32.mrf.mxu0 }
 0x4e8   :  { %v518_v12 = vadd.f32 %v517_v9, %v407_v7 }
 0x4e9   :  { %v519_v13 = vpop.f32.mrf.mxu0 }
 0x4ea   :  { %526 = vrot.lane.b32.xlu0 %v518_v12, %s698_s16  ;;  %524 = vst.msk [vmem:[#allocation2] sm:$0x3] %vm523_vm6, %v518_v12 }
 0x4eb   :  { %v520_v11 = vpop.f32.mrf.mxu0 }
 0x4ec   :  { %683 = shalt.err (!%p680_p4)
}
 0x4ed   :  { %540 = dma.vmem_to_hbm [thread:$0]  %s538_s15, 32, %s882_s3, [#allocation3]   ;;  %v521_v8 = vpop.f32.mrf.mxu0  ;;  %vm529_vm7 = vcmask 1024  }
 0x55c   :  { %v527_v10 = vpop.permute.xlu0 %526 }
 0x55d   :  { %530 = vst.msk [vmem:[%s883_s4] sm:$0x3] %vm529_vm7, %v527_v10 }
 0x55e   :  { %692 = dma.done.wait [#allocation3], 32  }
 0x55f   :  { %693 = vsyncadd [#allocation3], 4294967264 }
 0x560   :  { %548 = vsyncpa [#allocation3], 1 }

</bundles_post_ra>
